<compile_context>
chip_gen: v6e
topology: v6e:2x2x1
jax: 0.10.0
libtpu: 0.0.40
codegen_flags: <defaults>
</compile_context>

<pallas_src>
import jax
import jax.numpy as jnp
from jax.experimental import pallas as pl
from jax.experimental.pallas import tpu as pltpu

LANES = 128


def _round_up(v, m):
    return ((v + m - 1) // m) * m


def make_mlp_kernel(n_layers):
    """Fused MLP kernel for `n_layers` Linear layers.

    refs layout: (x_ref, W0, b0, W1, b1, ..., W_{n-1}, b_{n-1}, out_ref)
    ReLU after every layer except the last; the last layer is followed by
    log_softmax along axis 1 (padded class columns carry bias -1e30).
    """

    def kernel(*refs):
        x_ref = refs[0]
        out_ref = refs[-1]
        # In-kernel bf16 cast of the f32 x tile (VPU op hidden under the DMA).
        h = x_ref[...].astype(jnp.bfloat16)
        for l in range(n_layers):
            w = refs[1 + 2 * l][...]          # bf16 (K_l, N_l), VMEM-resident
            b = refs[2 + 2 * l][...]          # f32  (1,  N_l)
            z = jnp.dot(h, w, preferred_element_type=jnp.float32) + b
            if l < n_layers - 1:
                # Down-cast once, then ReLU in bf16 (bf16 VALUs on v6e/v7x;
                # order is numerically identical to f32 ReLU then cast).
                h = jnp.maximum(z.astype(jnp.bfloat16), 0.0)
                # Dropout = identity (eval mode).
            else:
                h = z                          # keep logits in f32
        # log_softmax along dim=1 in f32. Padded columns contribute
        # exp(-1e30 - m) == 0, so the normalizer is exact.
        m = jnp.max(h, axis=1, keepdims=True)
        e = jnp.exp(h - m)
        lse = jnp.log(jnp.sum(e, axis=1, keepdims=True)) + m
        out_ref[...] = (h - lse).astype(out_ref.dtype)

    return kernel


def classifier_forward(x, params, *, tb=512, out_dtype=jnp.float32):
    """Run the fused Classifier forward pass as a single Pallas kernel.

    x         : any shape (B, ...) — flattened to (B, D) like x.view(B, -1)
    params    : list of (W, b) with W shaped (in, out), b shaped (1, out)
    tb        : requested batch tile (rows per grid step)
    out_dtype : output dtype (f32 default; bf16 halves output HBM traffic if
                downstream tolerates reduced log-prob precision)
    """
    B = int(x.shape[0])
    x2 = x.reshape(B, -1)                      # f32 stays in HBM; cast in-kernel
    D = int(x2.shape[1])
    n_layers = len(params)
    out_size = int(params[-1][0].shape[1])
    out_pad = _round_up(out_size, LANES)
    out_itemsize = jnp.dtype(out_dtype).itemsize

    # ---- pad every layer's output width to a lane-dense multiple of 128 ----
    # Hidden pads are zero weight cols / zero bias (ReLU(0) = 0, and the next
    # layer's corresponding weight rows are zero), so the result is unchanged.
    # The final class dim gets bias -1e30 so exp() underflows to exactly 0.
    padded_params = []
    prev_pad = D
    for li, (w, b) in enumerate(params):
        k, n = int(w.shape[0]), int(w.shape[1])
        n_pad = _round_up(n, LANES)
        w = w.astype(jnp.bfloat16)
        b = b.astype(jnp.float32).reshape(1, -1)
        if prev_pad != k:                      # zero rows for padded activations
            w = jnp.pad(w, ((0, prev_pad - k), (0, 0)))
        if n_pad != n:
            w = jnp.pad(w, ((0, 0), (0, n_pad - n)))
            fill = jnp.float32(-1e30) if li == n_layers - 1 else jnp.float32(0.0)
            b = jnp.pad(b, ((0, 0), (0, n_pad - n)), constant_values=fill)
        padded_params.append((w, b))
        prev_pad = n_pad

    weight_bytes = sum(int(w.size) * w.dtype.itemsize +
                       int(b.size) * b.dtype.itemsize
                       for w, b in padded_params)
    max_width = max(D, max(int(w.shape[1]) for w, _ in padded_params))
    x_itemsize = x2.dtype.itemsize

    # ---- VMEM budget from the actual chip (valid on v7x's 64 MiB per-TC) ----
    try:
        vmem_cap = int(pltpu.get_tpu_info().vmem_capacity_bytes)
    except Exception:
        vmem_cap = 64 * 1024 * 1024            # conservative fallback
    vmem_budget = min(vmem_cap * 3 // 4, 100 * 1024 * 1024)

    def vmem_need(tb_rows, weight_bufs):
        x_tiles = 2 * tb_rows * D * x_itemsize            # double-buffered x
        o_tiles = 2 * tb_rows * out_pad * out_itemsize     # double-buffered out
        act = 3 * tb_rows * max_width * 4                  # activation slack
        return weight_bufs * weight_bytes + x_tiles + o_tiles + act

    # ---- batch tile selection (no wrapper-side padding of B) ---------------
    tb_eff = int(tb)
    if B > 32:
        # keep >= 2 tiles so both v7x TensorCores get work
        tb_eff = min(tb_eff, _round_up(pl.cdiv(B, 2), 16))
    while tb_eff > 16 and vmem_need(tb_eff, 1) > vmem_budget:
        tb_eff = max(16, _round_up(tb_eff // 2, 16))
    if B <= tb_eff:
        tb_eff = B                              # single full-batch tile (legal)
    else:
        tb_eff = max(8, (tb_eff // 8) * 8)      # ragged last tile handled by Pallas
    grid = (pl.cdiv(B, tb_eff),)

    vmem_limit = int(min(max(vmem_need(tb_eff, 2) * 5 // 4, 32 * 1024 * 1024),
                         vmem_budget))

    # ---- cost estimate (scheduler hint) -------------------------------------
    flops = 2 * B * sum(int(w.shape[0]) * int(w.shape[1])
                        for w, _ in padded_params)
    transcendentals = B * out_pad              # exp in log_softmax
    bytes_accessed = (int(x2.size) * x_itemsize
                      + weight_bytes
                      + B * out_pad * out_itemsize)

    kernel = make_mlp_kernel(n_layers)

    def build_and_run(single_buffer_consts):
        inputs = [x2]
        in_specs = [pl.BlockSpec((tb_eff, D), lambda i: (i, 0))]
        const_kw = ({"pipeline_mode": pl.Buffered(1)}
                    if single_buffer_consts else {})
        for (w, b) in padded_params:
            inputs.append(w)
            inputs.append(b)
            # constant index_map -> DMA'd once, VMEM-resident across the grid
            in_specs.append(pl.BlockSpec(w.shape, lambda i: (0, 0), **const_kw))
            in_specs.append(pl.BlockSpec(b.shape, lambda i: (0, 0), **const_kw))
        return pl.pallas_call(
            kernel,
            out_shape=jax.ShapeDtypeStruct((B, out_pad), out_dtype),
            grid=grid,
            in_specs=in_specs,
            out_specs=pl.BlockSpec((tb_eff, out_pad), lambda i: (i, 0)),
            compiler_params=pltpu.CompilerParams(
                dimension_semantics=("parallel",),   # batch tiles independent
                vmem_limit_bytes=vmem_limit,
            ),
            cost_estimate=pl.CostEstimate(
                flops=flops,
                transcendentals=transcendentals,
                bytes_accessed=bytes_accessed,
            ),
        )(*inputs)

    try:
        out = build_and_run(True)     # single-buffer the VMEM-resident weights
    except Exception:
        out = build_and_run(False)    # fallback: default double-buffering

    # Strip the lane-padding of the class dimension.
    return out[:, :out_size]


def init_params(key, input_size, output_size, hidden_layers):
    """Deterministic init mirroring the nn.Linear shapes of Classifier."""
    sizes = [input_size] + list(hidden_layers) + [output_size]
    params = []
    for i in range(len(sizes) - 1):
        fan_in, fan_out = sizes[i], sizes[i + 1]
        key, kw, kb = jax.random.split(key, 3)
        bound = 1.0 / jnp.sqrt(fan_in)
        # PyTorch Linear weight is (out, in); we store its transpose (in, out).
        w = jax.random.uniform(kw, (fan_in, fan_out), jnp.float32, -bound, bound)
        b = jax.random.uniform(kb, (1, fan_out), jnp.float32, -bound, bound)
        params.append((w, b))
    return params


if __name__ == "__main__":
    key = jax.random.PRNGKey(0)
    key, kx = jax.random.split(key)

    # Small example shapes consistent with the module's forward:
    # x of shape (2, 4, 16, 16) -> flattened input_size = 4*16*16 = 1024
    B, C, H, W = 2, 4, 16, 16
    input_size = C * H * W
    hidden_layers = [64, 32]
    output_size = 10

    x = jax.random.normal(kx, (B, C, H, W), jnp.float32)
    params = init_params(key, input_size, output_size, hidden_layers)

    out = classifier_forward(x, params)
    out = jax.block_until_ready(out)

    assert out.shape == (B, output_size)
    # Sanity: log_softmax rows should exp-sum to ~1
    row_sums = jnp.sum(jnp.exp(out), axis=1)
    assert bool(jnp.all(jnp.abs(row_sums - 1.0) < 1e-3))

    # Sanity vs a pure-JAX reference (bf16 matmul inputs, f32 accumulate).
    def ref_forward(xr, ps):
        h = xr.reshape(xr.shape[0], -1).astype(jnp.bfloat16)
        for li, (w, b) in enumerate(ps):
            h = jnp.dot(h.astype(jnp.bfloat16), w.astype(jnp.bfloat16),
                        preferred_element_type=jnp.float32) + b
            if li < len(ps) - 1:
                h = jnp.maximum(h, 0.0)
        return jax.nn.log_softmax(h, axis=1)

    ref = ref_forward(x, params)
    assert bool(jnp.all(jnp.abs(out - ref) < 1e-3))

    print("KERNEL_OK")
</pallas_src>

<mosaic_0001>
module attributes {stable_mosaic.version = 11 : i64} {
  func.func @kernel(%arg0: i32, %arg1: memref<2x1024xf32, #tpu.memory_space<vmem>>, %arg2: memref<1024x128xbf16, #tpu.memory_space<vmem>>, %arg3: memref<1x128xf32, #tpu.memory_space<vmem>>, %arg4: memref<128x128xbf16, #tpu.memory_space<vmem>>, %arg5: memref<1x128xf32, #tpu.memory_space<vmem>>, %arg6: memref<128x128xbf16, #tpu.memory_space<vmem>>, %arg7: memref<1x128xf32, #tpu.memory_space<vmem>>, %arg8: memref<2x128xf32, #tpu.memory_space<vmem>>) attributes {dimension_semantics = [#tpu.dimension_semantics<parallel>], iteration_bounds = array<i64: 1>, scalar_prefetch = 0 : i64, scratch_operands = 0 : i64, tpu.core_type = #tpu.core_type<tc>, window_params = [{transform_indices = @transform_0, window_bounds = array<i64: 2, 1024>}, {pipeline_mode = #tpu.pipeline_mode<synchronous>, transform_indices = @transform_1, window_bounds = array<i64: 1024, 128>}, {pipeline_mode = #tpu.pipeline_mode<synchronous>, transform_indices = @transform_2, window_bounds = array<i64: 1, 128>}, {pipeline_mode = #tpu.pipeline_mode<synchronous>, transform_indices = @transform_3, window_bounds = array<i64: 128, 128>}, {pipeline_mode = #tpu.pipeline_mode<synchronous>, transform_indices = @transform_4, window_bounds = array<i64: 1, 128>}, {pipeline_mode = #tpu.pipeline_mode<synchronous>, transform_indices = @transform_5, window_bounds = array<i64: 128, 128>}, {pipeline_mode = #tpu.pipeline_mode<synchronous>, transform_indices = @transform_6, window_bounds = array<i64: 1, 128>}, {transform_indices = @transform_7, window_bounds = array<i64: 2, 128>}]} {
    %c0 = arith.constant 0 : index
    %c0_0 = arith.constant 0 : index
    %0 = vector.load %arg1[%c0, %c0_0] : memref<2x1024xf32, #tpu.memory_space<vmem>>, vector<2x1024xf32>
    %1 = arith.truncf %0 : vector<2x1024xf32> to vector<2x1024xbf16>
    %c0_1 = arith.constant 0 : index
    %c0_2 = arith.constant 0 : index
    %2 = vector.load %arg2[%c0_1, %c0_2] : memref<1024x128xbf16, #tpu.memory_space<vmem>>, vector<1024x128xbf16>
    %c0_3 = arith.constant 0 : index
    %c0_4 = arith.constant 0 : index
    %3 = vector.load %arg3[%c0_3, %c0_4] : memref<1x128xf32, #tpu.memory_space<vmem>>, vector<1x128xf32>
    %cst = arith.constant dense<0.000000e+00> : vector<2x128xf32>
    %4 = tpu.matmul %1, %2, %cst {dimension_numbers = #tpu.dot_dimension_numbers<[1], [0], [0], [1], [0, 0, 1, 1], [], []>} : vector<2x1024xbf16>, vector<1024x128xbf16>, vector<2x128xf32> -> vector<2x128xf32>
    %5 = vector.broadcast %3 : vector<1x128xf32> to vector<2x128xf32>
    %6 = arith.addf %4, %5 : vector<2x128xf32>
    %7 = arith.truncf %6 : vector<2x128xf32> to vector<2x128xbf16>
    %cst_5 = arith.constant 0.000000e+00 : bf16
    %8 = vector.broadcast %cst_5 : bf16 to vector<2x128xbf16>
    %9 = arith.maximumf %7, %8 : vector<2x128xbf16>
    %c0_6 = arith.constant 0 : index
    %c0_7 = arith.constant 0 : index
    %10 = vector.load %arg4[%c0_6, %c0_7] : memref<128x128xbf16, #tpu.memory_space<vmem>>, vector<128x128xbf16>
    %c0_8 = arith.constant 0 : index
    %c0_9 = arith.constant 0 : index
    %11 = vector.load %arg5[%c0_8, %c0_9] : memref<1x128xf32, #tpu.memory_space<vmem>>, vector<1x128xf32>
    %cst_10 = arith.constant dense<0.000000e+00> : vector<2x128xf32>
    %12 = tpu.matmul %9, %10, %cst_10 {dimension_numbers = #tpu.dot_dimension_numbers<[1], [0], [0], [1], [0, 0, 1, 1], [], []>} : vector<2x128xbf16>, vector<128x128xbf16>, vector<2x128xf32> -> vector<2x128xf32>
    %13 = vector.broadcast %11 : vector<1x128xf32> to vector<2x128xf32>
    %14 = arith.addf %12, %13 : vector<2x128xf32>
    %15 = arith.truncf %14 : vector<2x128xf32> to vector<2x128xbf16>
    %cst_11 = arith.constant 0.000000e+00 : bf16
    %16 = vector.broadcast %cst_11 : bf16 to vector<2x128xbf16>
    %17 = arith.maximumf %15, %16 : vector<2x128xbf16>
    %c0_12 = arith.constant 0 : index
    %c0_13 = arith.constant 0 : index
    %18 = vector.load %arg6[%c0_12, %c0_13] : memref<128x128xbf16, #tpu.memory_space<vmem>>, vector<128x128xbf16>
    %c0_14 = arith.constant 0 : index
    %c0_15 = arith.constant 0 : index
    %19 = vector.load %arg7[%c0_14, %c0_15] : memref<1x128xf32, #tpu.memory_space<vmem>>, vector<1x128xf32>
    %cst_16 = arith.constant dense<0.000000e+00> : vector<2x128xf32>
    %20 = tpu.matmul %17, %18, %cst_16 {dimension_numbers = #tpu.dot_dimension_numbers<[1], [0], [0], [1], [0, 0, 1, 1], [], []>} : vector<2x128xbf16>, vector<128x128xbf16>, vector<2x128xf32> -> vector<2x128xf32>
    %21 = vector.broadcast %19 : vector<1x128xf32> to vector<2x128xf32>
    %22 = arith.addf %20, %21 : vector<2x128xf32>
    %cst_17 = arith.constant dense<0xFF800000> : vector<2xf32>
    %23 = vector.multi_reduction <maximumf>, %22, %cst_17 [1] : vector<2x128xf32> to vector<2xf32>
    %24 = vector.shape_cast %23 : vector<2xf32> to vector<2x1xf32>
    %25 = vector.broadcast %24 : vector<2x1xf32> to vector<2x128xf32>
    %26 = arith.subf %22, %25 : vector<2x128xf32>
    %27 = math.exp %26 : vector<2x128xf32>
    %cst_18 = arith.constant dense<0.000000e+00> : vector<2xf32>
    %28 = vector.multi_reduction <add>, %27, %cst_18 [1] : vector<2x128xf32> to vector<2xf32>
    %29 = vector.shape_cast %28 : vector<2xf32> to vector<2x1xf32>
    %30 = math.log %29 : vector<2x1xf32>
    %31 = arith.addf %30, %24 : vector<2x1xf32>
    %32 = vector.broadcast %31 : vector<2x1xf32> to vector<2x128xf32>
    %33 = arith.subf %22, %32 : vector<2x128xf32>
    %c0_19 = arith.constant 0 : index
    %c0_20 = arith.constant 0 : index
    %34 = vector.load %arg8[%c0_19, %c0_20] : memref<2x128xf32, #tpu.memory_space<vmem>>, vector<2x128xf32>
    tpu.vector_store %arg8[%c0_19, %c0_20], %33 {strides = array<i32>} : memref<2x128xf32, #tpu.memory_space<vmem>>, vector<2x128xf32>,
    return
  }
  func.func @transform_0(%arg0: i32) -> (i32, i32) {
    %c0_i32 = arith.constant 0 : i32
    %c0_i32_0 = arith.constant 0 : i32
    return %arg0, %c0_i32 : i32, i32
  }
  func.func @transform_1(%arg0: i32) -> (i32, i32) {
    %c0_i32 = arith.constant 0 : i32
    %c0_i32_0 = arith.constant 0 : i32
    %c0_i32_1 = arith.constant 0 : i32
    return %c0_i32, %c0_i32_0 : i32, i32
  }
  func.func @transform_2(%arg0: i32) -> (i32, i32) {
    %c0_i32 = arith.constant 0 : i32
    %c0_i32_0 = arith.constant 0 : i32
    %c0_i32_1 = arith.constant 0 : i32
    return %c0_i32, %c0_i32_0 : i32, i32
  }
  func.func @transform_3(%arg0: i32) -> (i32, i32) {
    %c0_i32 = arith.constant 0 : i32
    %c0_i32_0 = arith.constant 0 : i32
    %c0_i32_1 = arith.constant 0 : i32
    return %c0_i32, %c0_i32_0 : i32, i32
  }
  func.func @transform_4(%arg0: i32) -> (i32, i32) {
    %c0_i32 = arith.constant 0 : i32
    %c0_i32_0 = arith.constant 0 : i32
    %c0_i32_1 = arith.constant 0 : i32
    return %c0_i32, %c0_i32_0 : i32, i32
  }
  func.func @transform_5(%arg0: i32) -> (i32, i32) {
    %c0_i32 = arith.constant 0 : i32
    %c0_i32_0 = arith.constant 0 : i32
    %c0_i32_1 = arith.constant 0 : i32
    return %c0_i32, %c0_i32_0 : i32, i32
  }
  func.func @transform_6(%arg0: i32) -> (i32, i32) {
    %c0_i32 = arith.constant 0 : i32
    %c0_i32_0 = arith.constant 0 : i32
    %c0_i32_1 = arith.constant 0 : i32
    return %c0_i32, %c0_i32_0 : i32, i32
  }
  func.func @transform_7(%arg0: i32) -> (i32, i32) {
    %c0_i32 = arith.constant 0 : i32
    %c0_i32_0 = arith.constant 0 : i32
    return %arg0, %c0_i32 : i32, i32
  }
}

module attributes {stable_mosaic.version = 11 : i64} {
  func.func @kernel(%arg0: i32, %arg1: memref<2x1024xf32, #tpu.memory_space<vmem>>, %arg2: memref<1024x128xbf16, #tpu.memory_space<vmem>>, %arg3: memref<1x128xf32, #tpu.memory_space<vmem>>, %arg4: memref<128x128xbf16, #tpu.memory_space<vmem>>, %arg5: memref<1x128xf32, #tpu.memory_space<vmem>>, %arg6: memref<128x128xbf16, #tpu.memory_space<vmem>>, %arg7: memref<1x128xf32, #tpu.memory_space<vmem>>, %arg8: memref<2x128xf32, #tpu.memory_space<vmem>>) attributes {dimension_semantics = [#tpu.dimension_semantics<parallel>], iteration_bounds = array<i64: 1>, scalar_prefetch = 0 : i64, scratch_operands = 0 : i64, tpu.core_type = #tpu.core_type<tc>, window_params = [{transform_indices = @transform_0, window_bounds = array<i64: 2, 1024>}, {pipeline_mode = #tpu.pipeline_mode<synchronous>, transform_indices = @transform_1, window_bounds = array<i64: 1024, 128>}, {pipeline_mode = #tpu.pipeline_mode<synchronous>, transform_indices = @transform_2, window_bounds = array<i64: 1, 128>}, {pipeline_mode = #tpu.pipeline_mode<synchronous>, transform_indices = @transform_3, window_bounds = array<i64: 128, 128>}, {pipeline_mode = #tpu.pipeline_mode<synchronous>, transform_indices = @transform_4, window_bounds = array<i64: 1, 128>}, {pipeline_mode = #tpu.pipeline_mode<synchronous>, transform_indices = @transform_5, window_bounds = array<i64: 128, 128>}, {pipeline_mode = #tpu.pipeline_mode<synchronous>, transform_indices = @transform_6, window_bounds = array<i64: 1, 128>}, {transform_indices = @transform_7, window_bounds = array<i64: 2, 128>}]} {
    %c0 = arith.constant 0 : index
    %c0_0 = arith.constant 0 : index
    %0 = vector.load %arg1[%c0, %c0_0] : memref<2x1024xf32, #tpu.memory_space<vmem>>, vector<2x1024xf32>
    %1 = arith.truncf %0 : vector<2x1024xf32> to vector<2x1024xbf16>
    %c0_1 = arith.constant 0 : index
    %c0_2 = arith.constant 0 : index
    %2 = vector.load %arg2[%c0_1, %c0_2] : memref<1024x128xbf16, #tpu.memory_space<vmem>>, vector<1024x128xbf16>
    %c0_3 = arith.constant 0 : index
    %c0_4 = arith.constant 0 : index
    %3 = vector.load %arg3[%c0_3, %c0_4] : memref<1x128xf32, #tpu.memory_space<vmem>>, vector<1x128xf32>
    %cst = arith.constant dense<0.000000e+00> : vector<2x128xf32>
    %4 = tpu.matmul %1, %2, %cst {dimension_numbers = #tpu.dot_dimension_numbers<[1], [0], [0], [1], [0, 0, 1, 1], [], []>} : vector<2x1024xbf16>, vector<1024x128xbf16>, vector<2x128xf32> -> vector<2x128xf32>
    %5 = vector.broadcast %3 : vector<1x128xf32> to vector<2x128xf32>
    %6 = arith.addf %4, %5 : vector<2x128xf32>
    %7 = arith.truncf %6 : vector<2x128xf32> to vector<2x128xbf16>
    %cst_5 = arith.constant 0.000000e+00 : bf16
    %8 = vector.broadcast %cst_5 : bf16 to vector<2x128xbf16>
    %9 = arith.maximumf %7, %8 : vector<2x128xbf16>
    %c0_6 = arith.constant 0 : index
    %c0_7 = arith.constant 0 : index
    %10 = vector.load %arg4[%c0_6, %c0_7] : memref<128x128xbf16, #tpu.memory_space<vmem>>, vector<128x128xbf16>
    %c0_8 = arith.constant 0 : index
    %c0_9 = arith.constant 0 : index
    %11 = vector.load %arg5[%c0_8, %c0_9] : memref<1x128xf32, #tpu.memory_space<vmem>>, vector<1x128xf32>
    %cst_10 = arith.constant dense<0.000000e+00> : vector<2x128xf32>
    %12 = tpu.matmul %9, %10, %cst_10 {dimension_numbers = #tpu.dot_dimension_numbers<[1], [0], [0], [1], [0, 0, 1, 1], [], []>} : vector<2x128xbf16>, vector<128x128xbf16>, vector<2x128xf32> -> vector<2x128xf32>
    %13 = vector.broadcast %11 : vector<1x128xf32> to vector<2x128xf32>
    %14 = arith.addf %12, %13 : vector<2x128xf32>
    %15 = arith.truncf %14 : vector<2x128xf32> to vector<2x128xbf16>
    %cst_11 = arith.constant 0.000000e+00 : bf16
    %16 = vector.broadcast %cst_11 : bf16 to vector<2x128xbf16>
    %17 = arith.maximumf %15, %16 : vector<2x128xbf16>
    %c0_12 = arith.constant 0 : index
    %c0_13 = arith.constant 0 : index
    %18 = vector.load %arg6[%c0_12, %c0_13] : memref<128x128xbf16, #tpu.memory_space<vmem>>, vector<128x128xbf16>
    %c0_14 = arith.constant 0 : index
    %c0_15 = arith.constant 0 : index
    %19 = vector.load %arg7[%c0_14, %c0_15] : memref<1x128xf32, #tpu.memory_space<vmem>>, vector<1x128xf32>
    %cst_16 = arith.constant dense<0.000000e+00> : vector<2x128xf32>
    %20 = tpu.matmul %17, %18, %cst_16 {dimension_numbers = #tpu.dot_dimension_numbers<[1], [0], [0], [1], [0, 0, 1, 1], [], []>} : vector<2x128xbf16>, vector<128x128xbf16>, vector<2x128xf32> -> vector<2x128xf32>
    %21 = vector.broadcast %19 : vector<1x128xf32> to vector<2x128xf32>
    %22 = arith.addf %20, %21 : vector<2x128xf32>
    %cst_17 = arith.constant dense<0xFF800000> : vector<2xf32>
    %23 = vector.multi_reduction <maximumf>, %22, %cst_17 [1] : vector<2x128xf32> to vector<2xf32>
    %24 = vector.shape_cast %23 : vector<2xf32> to vector<2x1xf32>
    %25 = vector.broadcast %24 : vector<2x1xf32> to vector<2x128xf32>
    %26 = arith.subf %22, %25 : vector<2x128xf32>
    %27 = math.exp %26 : vector<2x128xf32>
    %cst_18 = arith.constant dense<0.000000e+00> : vector<2xf32>
    %28 = vector.multi_reduction <add>, %27, %cst_18 [1] : vector<2x128xf32> to vector<2xf32>
    %29 = vector.shape_cast %28 : vector<2xf32> to vector<2x1xf32>
    %30 = math.log %29 : vector<2x1xf32>
    %31 = arith.addf %30, %24 : vector<2x1xf32>
    %32 = vector.broadcast %31 : vector<2x1xf32> to vector<2x128xf32>
    %33 = arith.subf %22, %32 : vector<2x128xf32>
    %c0_19 = arith.constant 0 : index
    %c0_20 = arith.constant 0 : index
    %34 = vector.load %arg8[%c0_19, %c0_20] : memref<2x128xf32, #tpu.memory_space<vmem>>, vector<2x128xf32>
    tpu.vector_store %arg8[%c0_19, %c0_20], %33 {strides = array<i32>} : memref<2x128xf32, #tpu.memory_space<vmem>>, vector<2x128xf32>,
    return
  }
  func.func @transform_0(%arg0: i32) -> (i32, i32) {
    %c0_i32 = arith.constant 0 : i32
    %c0_i32_0 = arith.constant 0 : i32
    return %arg0, %c0_i32 : i32, i32
  }
  func.func @transform_1(%arg0: i32) -> (i32, i32) {
    %c0_i32 = arith.constant 0 : i32
    %c0_i32_0 = arith.constant 0 : i32
    %c0_i32_1 = arith.constant 0 : i32
    return %c0_i32, %c0_i32_0 : i32, i32
  }
  func.func @transform_2(%arg0: i32) -> (i32, i32) {
    %c0_i32 = arith.constant 0 : i32
    %c0_i32_0 = arith.constant 0 : i32
    %c0_i32_1 = arith.constant 0 : i32
    return %c0_i32, %c0_i32_0 : i32, i32
  }
  func.func @transform_3(%arg0: i32) -> (i32, i32) {
    %c0_i32 = arith.constant 0 : i32
    %c0_i32_0 = arith.constant 0 : i32
    %c0_i32_1 = arith.constant 0 : i32
    return %c0_i32, %c0_i32_0 : i32, i32
  }
  func.func @transform_4(%arg0: i32) -> (i32, i32) {
    %c0_i32 = arith.constant 0 : i32
    %c0_i32_0 = arith.constant 0 : i32
    %c0_i32_1 = arith.constant 0 : i32
    return %c0_i32, %c0_i32_0 : i32, i32
  }
  func.func @transform_5(%arg0: i32) -> (i32, i32) {
    %c0_i32 = arith.constant 0 : i32
    %c0_i32_0 = arith.constant 0 : i32
    %c0_i32_1 = arith.constant 0 : i32
    return %c0_i32, %c0_i32_0 : i32, i32
  }
  func.func @transform_6(%arg0: i32) -> (i32, i32) {
    %c0_i32 = arith.constant 0 : i32
    %c0_i32_0 = arith.constant 0 : i32
    %c0_i32_1 = arith.constant 0 : i32
    return %c0_i32, %c0_i32_0 : i32, i32
  }
  func.func @transform_7(%arg0: i32) -> (i32, i32) {
    %c0_i32 = arith.constant 0 : i32
    %c0_i32_0 = arith.constant 0 : i32
    return %arg0, %c0_i32 : i32, i32
  }
}

</mosaic_0001>

<bundles_post_ra>
// kernel: tpu_custom_call.1
= control target key start
LH: loop header
LB: loop body
LE: loop exit
PB: predicated region body
PF: predicated region fallthrough
CT: control target
= control target key end

     0   :  { %12 = vsyncpa [#allocation3], 0  ;;  %s1614_s0 = inlined_call_operand.hbm [shape: f32[2,1024], index: 0, kind: input, shape index: {}]   ;;  %s1615_s1 = inlined_call_operand.hbm [shape: bf16[1024,128], index: 1, kind: input, shape index: {}]   ;;  %s1616_s2 = inlined_call_operand.vmem [shape: f32[1,128], index: 2, kind: input, shape index: {}]   ;;  %s1617_s3 = inlined_call_operand.hbm [shape: bf16[128,128], index: 3, kind: input, shape index: {}]   ;;  %s1618_s4 = inlined_call_operand.vmem [shape: f32[1,128], index: 4, kind: input, shape index: {}]   ;;  %s1619_s5 = inlined_call_operand.hbm [shape: bf16[128,128], index: 5, kind: input, shape index: {}]   ;;  %s1620_s6 = inlined_call_operand.vmem [shape: f32[1,128], index: 6, kind: input, shape index: {}]   ;;  %s1621_s7 = inlined_call_operand.hbm [shape: f32[2,128], index: 7, kind: output, shape index: {}]  }
   0x1   :  { %13 = vsyncpa [#allocation6], 0 }
   0x2   :  { %14 = vsyncpa [#allocation9], 0 }
   0x3   :  { %15 = vsyncpa [#allocation4], 0  ;;  %s1506_s24 = smov [#allocation5]  }
   0x4   :  { %s31_s25 = sshll.u32 %s1506_s24, 4  ;;  %s32_s25 = int_to_ptr.vmem [resolvable:$true] %s31_s25 }
   0x5   :  { %s1406_s26 = scalar_lea.vmem %s32_s25, 8192  ;;  %p1411_p1 = scmp.lt.s32.totalorder %s32_s25, %s32_s25 }
   0x6   :  { %p1407_p0 = scmp.ne.s32.totalorder %s32_s25, %s1406_s26  ;;  %p1412_p2 = scmp.lt.s32.totalorder %s1406_s26, %s1406_s26 }
   0x8   :  { %p1413_p3 = por %p1412_p2, %p1411_p1 }
   0xa   :  { %p1414_p4 = pnand %p1413_p3, %p1407_p0 }
   0xc   :  { %1417 = shalt.err (!%p1414_p4)
}
   0xd   :  { %s1507_s27 = smov 64   ;;  %s1508_s28 = smov 4  }
   0xe   :  { %37 = dma.hbm_to_vmem [thread:$0]  %s1615_s1, 8192, %s32_s25, [#allocation6], %s1507_s27, %s1507_s27, %s1508_s28  }
   0xf   :  { %s1509_s8 = smov [#allocation2]   ;;  %s1510_s10 = smov [#allocation7]  }
  0x10   :  { %s22_s9 = sshll.u32 %s1509_s8, 4  ;;  %s45_s11 = sshll.u32 %s1510_s10, 4  ;;  %s23_s9 = int_to_ptr.vmem [resolvable:$true] %s22_s9  ;;  %s46_s11 = int_to_ptr.vmem [resolvable:$true] %s45_s11 }
  0x11   :  { %s1426_s12 = scalar_lea.vmem %s23_s9, 256  ;;  %p1431_p6 = scmp.lt.s32.totalorder %s23_s9, %s23_s9 }
  0x12   :  { %p1427_p5 = scmp.ne.s32.totalorder %s23_s9, %s1426_s12  ;;  %p1432_p7 = scmp.lt.s32.totalorder %s1426_s12, %s1426_s12 }
  0x14   :  { %p1433_p8 = por %p1432_p7, %p1431_p6 }
  0x16   :  { %p1434_p9 = pnand %p1433_p8, %p1427_p5 }
  0x18   :  { %1437 = shalt.err (!%p1434_p9)
}
  0x19   :  { %25 = dma.hbm_to_vmem [thread:$0]  %s1614_s0, 256, %s23_s9, [#allocation3]  }
  0x1a   :  { %s1446_s15 = scalar_lea.vmem %s46_s11, 1024  ;;  %p1451_p11 = scmp.lt.s32.totalorder %s46_s11, %s46_s11 }
  0x1b   :  { %p1447_p10 = scmp.ne.s32.totalorder %s46_s11, %s1446_s15  ;;  %p1452_p12 = scmp.lt.s32.totalorder %s1446_s15, %s1446_s15 }
  0x1d   :  { %p1453_p13 = por %p1452_p12, %p1451_p11 }
  0x1f   :  { %p1454_p0 = pnand %p1453_p13, %p1447_p10 }
  0x21   :  { %1457 = shalt.err (!%p1454_p0)
}
  0x22   :  { %51 = dma.hbm_to_vmem [thread:$0]  %s1617_s3, 1024, %s46_s11, [#allocation6], %s1507_s27, %s1507_s27, %s1508_s28  }
  0x23   :  { %s1511_s17 = smov [#allocation8]  }
  0x24   :  { %s59_s18 = sshll.u32 %s1511_s17, 4  ;;  %s60_s18 = int_to_ptr.vmem [resolvable:$true] %s59_s18 }
  0x25   :  { %s1466_s19 = scalar_lea.vmem %s60_s18, 1024  ;;  %p1471_p2 = scmp.lt.s32.totalorder %s60_s18, %s60_s18 }
  0x26   :  { %p1467_p1 = scmp.ne.s32.totalorder %s60_s18, %s1466_s19  ;;  %p1472_p3 = scmp.lt.s32.totalorder %s1466_s19, %s1466_s19 }
  0x28   :  { %p1473_p4 = por %p1472_p3, %p1471_p2 }
  0x2a   :  { %p1474_p5 = pnand %p1473_p4, %p1467_p1 }
  0x2c   :  { %1477 = shalt.err (!%p1474_p5)
}
  0x2d   :  { %65 = dma.hbm_to_vmem [thread:$0]  %s1619_s5, 1024, %s60_s18, [#allocation9], %s1507_s27, %s1507_s27, %s1508_s28  }
  0x2e   :  { %1498 = dma.done.wait [#allocation3], 256  }
  0x2f   :  { %1499 = vsyncadd [#allocation3], 4294967040 }
  0x30   :  { %1500 = dma.done.wait [#allocation6], 9216  }
  0x31   :  { %1501 = vsyncadd [#allocation6], 4294958080 }
  0x32   :  { %1502 = dma.done.wait [#allocation9], 1024  }
  0x33   :  { %1503 = vsyncadd [#allocation9], 4294966272  ;;  %v1312_v0 = vld [vmem:[#allocation5 + $0x78] sm:$0xff]   ;;  %v1316_v4 = vld [vmem:[#allocation5 + $0x70] sm:$0xff]   ;;  %v1512_v22 = vmov 1983009808   ;;  %v89_v24 = vlaneseq }
  0x34   :  { %v1313_v1 = vld [vmem:[#allocation5 + $0xf8] sm:$0xff]   ;;  %1155 = vmatprep.subr.bf16.mxu0 %v1312_v0  ;;  %v1317_v5 = vld [vmem:[#allocation5 + $0xf0] sm:$0xff]   ;;  %v1320_v8 = vld [vmem:[#allocation5 + $0x68] sm:$0xff]   ;;  %v87_v23 = vunpack.c.l.s4 %v1512_v22  ;;  %vm1514_vm0 = vmmov 0   ;;  %vm1040_vm1 = vcmask 1041408  }
  0x35   :  { %v1314_v2 = vld [vmem:[#allocation5 + $0x38] sm:$0xff]   ;;  %1177 = vmatprep.subr.bf16.mxu1 %v1313_v1  ;;  %v1318_v6 = vld [vmem:[#allocation5 + $0x30] sm:$0xff]   ;;  %v1321_v9 = vld [vmem:[#allocation5 + $0xe8] sm:$0xff]   ;;  %v90_v30 = vshrl.u32 %v89_v24, 7 }
  0x36   :  { %v1315_v3 = vld [vmem:[#allocation5 + $0xb8] sm:$0xff]   ;;  %1156 = vmatpush3.bf16.msra.mxu0 %v1314_v2  ;;  %v1319_v7 = vld [vmem:[#allocation5 + $0xb0] sm:$0xff]   ;;  %v1322_v10 = vld [vmem:[#allocation5 + $0x28] sm:$0xff]   ;;  %v88_v29 = vunpack.c.0.s8 %v87_v23 }
  0x37   :  { %1178 = vmatpush3.bf16.msra.mxu1 %v1315_v3  ;;  %1157 = vmatprep.subr.bf16.mxu0 %v1316_v4  ;;  %v1323_v11 = vld [vmem:[#allocation5 + $0xa8] sm:$0xff]   ;;  %v1324_v12 = vld [vmem:[#allocation5 + $0x60] sm:$0xff]   ;;  %v1328_v16 = vld [vmem:[#allocation5 + $0x58] sm:$0xff]  }
  0x38   :  { %1179 = vmatprep.subr.bf16.mxu1 %v1317_v5  ;;  %v1325_v13 = vld [vmem:[#allocation5 + $0xe0] sm:$0xff]   ;;  %v1329_v17 = vld [vmem:[#allocation5 + $0xd8] sm:$0xff]   ;;  %v1332_v20 = vld [vmem:[#allocation5 + $0x50] sm:$0xff]   ;;  %v1578_v35 = vsub.s32 %v88_v29, %v90_v30 }
  0x39   :  { %v1326_v14 = vld [vmem:[#allocation5 + $0x20] sm:$0xff]   ;;  %v1330_v18 = vld [vmem:[#allocation5 + $0x18] sm:$0xff]   ;;  %v1333_v21 = vld [vmem:[#allocation5 + $0xd0] sm:$0xff]  }
  0x3a   :  { %1158 = vmatpush3.bf16.msra.mxu0 %v1318_v6  ;;  %v1327_v15 = vld [vmem:[#allocation5 + $0xa0] sm:$0xff]   ;;  %v1331_v19 = vld [vmem:[#allocation5 + $0x98] sm:$0xff]   ;;  %v1334_v25 = vld [vmem:[#allocation5 + $0x10] sm:$0xff]  }
  0x3b   :  { %1180 = vmatpush3.bf16.msra.mxu1 %v1319_v7  ;;  %1159 = vmatprep.subr.bf16.mxu0 %v1320_v8  ;;  %v1335_v26 = vld [vmem:[#allocation5 + $0x90] sm:$0xff]   ;;  %v1336_v27 = vld [vmem:[#allocation5 + $0x48] sm:$0xff]   ;;  %v1340_v33 = vld [vmem:[#allocation5 + $0x40] sm:$0xff]  }
  0x3c   :  { %1181 = vmatprep.subr.bf16.mxu1 %v1321_v9  ;;  %v1337_v28 = vld [vmem:[#allocation5 + $0xc8] sm:$0xff]   ;;  %v1341_v34 = vld [vmem:[#allocation5 + $0xc0] sm:$0xff]   ;;  %v81_v38 = vld [vmem:[#allocation2] sm:$0xff] }
  0x3d   :  { %v1338_v31 = vld [vmem:[#allocation5 + $0x8] sm:$0xff]   ;;  %v1342_v36 = vld [vmem:[#allocation5] sm:$0xff]   ;;  %v92_v39 = vrot.slane %v81_v38, %v1578_v35  ;;  %v85_v40 = vcombine.high %v81_v38, %v81_v38  ;;  %v1345_v41 = vld [vmem:[#allocation5 + $0x178] sm:$0xff]  }
  0x3e   :  { %1160 = vmatpush3.bf16.msra.mxu0 %v1322_v10  ;;  %v1339_v32 = vld [vmem:[#allocation5 + $0x88] sm:$0xff]   ;;  %v1343_v37 = vld [vmem:[#allocation5 + $0x80] sm:$0xff]   ;;  %v1346_v42 = vld [vmem:[#allocation5 + $0x1f8] sm:$0xff]  }
  0x3f   :  { %1182 = vmatpush3.bf16.msra.mxu1 %v1323_v11  ;;  %1161 = vmatprep.subr.bf16.mxu0 %v1324_v12  ;;  %v100_v43 = vcombine.high %v92_v39, %v92_v39  ;;  %v99_v44 = vrot.slane %v85_v40, %v1578_v35  ;;  %v127_v45 = vpack.c.bf16 %v92_v39, %v92_v39  ;;  %v1347_v46 = vld [vmem:[#allocation5 + $0x138] sm:$0xff]   ;;  %v1349_v51 = vld [vmem:[#allocation5 + $0x170] sm:$0xff]   ;;  %v1353_v56 = vld [vmem:[#allocation5 + $0x168] sm:$0xff]  }
  0x40   :  { %1183 = vmatprep.subr.bf16.mxu1 %v1325_v13  ;;  %v1348_v49 = vld [vmem:[#allocation5 + $0x1b8] sm:$0xff]   ;;  %v1350_v53 = vld [vmem:[#allocation5 + $0x1f0] sm:$0xff]   ;;  %v1354_v57 = vld [vmem:[#allocation5 + $0x1e8] sm:$0xff]  }
  0x41   :  { %v128_v47 = vpack.c.bf16 %v100_v43, %v100_v43  ;;  %v101_v48 = vcombine.high %v99_v44, %v99_v44  ;;  %v129_v50 = vpack.c.bf16 %v99_v44, %v99_v44  ;;  %v1351_v54 = vld [vmem:[#allocation5 + $0x130] sm:$0xff]   ;;  %v1355_v58 = vld [vmem:[#allocation5 + $0x128] sm:$0xff]   ;;  %v1357_v60 = vld [vmem:[#allocation5 + $0x160] sm:$0xff]  }
  0x42   :  { %1162 = vmatpush3.bf16.msra.mxu0 %v1326_v14  ;;  %v1352_v55 = vld [vmem:[#allocation5 + $0x1b0] sm:$0xff]   ;;  %v1356_v59 = vld [vmem:[#allocation5 + $0x1a8] sm:$0xff]   ;;  %v1358_v61 = vld [vmem:[#allocation5 + $0x1e0] sm:$0xff]  }
  0x43   :  { %1184 = vmatpush3.bf16.msra.mxu1 %v1327_v15  ;;  %1163 = vmatprep.subr.bf16.mxu0 %v1328_v16  ;;  %v130_v52 = vpack.c.bf16 %v101_v48, %v101_v48  ;;  %v1359_v62 = vld [vmem:[#allocation5 + $0x120] sm:$0xff]   ;;  %v1361_v0 = vld [vmem:[#allocation5 + $0x158] sm:$0xff]   ;;  %v1365_v4 = vld [vmem:[#allocation5 + $0x150] sm:$0xff]  }
  0x44   :  { %1185 = vmatprep.subr.bf16.mxu1 %v1329_v17  ;;  %686 = vmatprep.mubr.bf16.mxu0 %v128_v47  ;;  %v1360_v63 = vld [vmem:[#allocation5 + $0x1a0] sm:$0xff]   ;;  %v1362_v1 = vld [vmem:[#allocation5 + $0x1d8] sm:$0xff]   ;;  %v1366_v5 = vld [vmem:[#allocation5 + $0x1d0] sm:$0xff]  }
  0x45   :  { %726 = vmatprep.mubr.bf16.mxu1 %v130_v52  ;;  %v1363_v2 = vld [vmem:[#allocation5 + $0x118] sm:$0xff]   ;;  %v1367_v6 = vld [vmem:[#allocation5 + $0x110] sm:$0xff]   ;;  %v1369_v8 = vld [vmem:[#allocation5 + $0x148] sm:$0xff]  }
  0x46   :  { %1164 = vmatpush3.bf16.msra.mxu0 %v1330_v18  ;;  %v1364_v3 = vld [vmem:[#allocation5 + $0x198] sm:$0xff]   ;;  %v1368_v7 = vld [vmem:[#allocation5 + $0x190] sm:$0xff]   ;;  %v1370_v9 = vld [vmem:[#allocation5 + $0x1c8] sm:$0xff]  }
  0x47   :  { %1186 = vmatpush3.bf16.msra.mxu1 %v1331_v19  ;;  %1165 = vmatprep.subr.bf16.mxu0 %v1332_v20  ;;  %v1371_v10 = vld [vmem:[#allocation5 + $0x108] sm:$0xff]   ;;  %v1373_v12 = vld [vmem:[#allocation5 + $0x140] sm:$0xff]   ;;  %v82_v15 = vld [vmem:[#allocation2 + $0x8] sm:$0xff] }
  0x48   :  { %1187 = vmatprep.subr.bf16.mxu1 %v1333_v21  ;;  %v1372_v11 = vld [vmem:[#allocation5 + $0x188] sm:$0xff]   ;;  %v1374_v13 = vld [vmem:[#allocation5 + $0x1c0] sm:$0xff]   ;;  %v109_v17 = vrot.slane %v82_v15, %v1578_v35  ;;  %v102_v18 = vcombine.high %v82_v15, %v82_v15  ;;  %v1390_v39 = vld [vmem:[#allocation8 + $0x18] sm:$0xff]  }
  0x49   :  { %v1375_v14 = vld [vmem:[#allocation5 + $0x100] sm:$0xff]   ;;  %v1380_v29 = vld [vmem:[#allocation7 + $0x28] sm:$0xff]   ;;  %v1391_v40 = vld [vmem:[#allocation8 + $0x10] sm:$0xff]  }
  0x4a   :  { %1166 = vmatpush3.bf16.msra.mxu0 %v1334_v25  ;;  %v1376_v16 = vld [vmem:[#allocation5 + $0x180] sm:$0xff]   ;;  %v117_v19 = vcombine.high %v109_v17, %v109_v17  ;;  %v116_v20 = vrot.slane %v102_v18, %v1578_v35  ;;  %v131_v21 = vpack.c.bf16 %v109_v17, %v109_v17  ;;  %v1386_v35 = vld [vmem:[#allocation8 + $0x38] sm:$0xff]   ;;  %v1146_v15 = vld [vmem:[%s1620_s6] ss:$0 sm:$0xff] }
  0x4b   :  { %1188 = vmatpush3.bf16.msra.mxu1 %v1335_v26  ;;  %1167 = vmatprep.subr.bf16.mxu0 %v1336_v27  ;;  %v1378_v26 = vld [vmem:[#allocation7 + $0x38] sm:$0xff]   ;;  %v1513_v27 = vmov 0.0   ;;  %v1381_v30 = vld [vmem:[#allocation7 + $0x20] sm:$0xff]  }
  0x4c   :  { %1189 = vmatprep.subr.bf16.mxu1 %v1337_v28  ;;  %v132_v22 = vpack.c.bf16 %v117_v19, %v117_v19  ;;  %v118_v23 = vcombine.high %v116_v20, %v116_v20  ;;  %v133_v24 = vpack.c.bf16 %v116_v20, %v116_v20  ;;  %v1379_v28 = vld [vmem:[#allocation7 + $0x30] sm:$0xff]   ;;  %v1389_v38 = vld [vmem:[#allocation8 + $0x20] sm:$0xff]  }
  0x4e   :  { %1168 = vmatpush3.bf16.msra.mxu0 %v1338_v31  ;;  %v134_v25 = vpack.c.bf16 %v118_v23, %v118_v23  ;;  %v1382_v31 = vld [vmem:[#allocation7 + $0x18] sm:$0xff]  }
  0x4f   :  { %1190 = vmatpush3.bf16.msra.mxu1 %v1339_v32  ;;  %1169 = vmatprep.subr.bf16.mxu0 %v1340_v33  ;;  %v1383_v32 = vld [vmem:[#allocation7 + $0x10] sm:$0xff]   ;;  %v1384_v33 = vld [vmem:[#allocation7 + $0x8] sm:$0xff]  }
  0x50   :  { %1191 = vmatprep.subr.bf16.mxu1 %v1341_v34  ;;  %v1385_v34 = vld [vmem:[#allocation7] sm:$0xff]  }
  0x52   :  { %1170 = vmatpush3.bf16.msra.mxu0 %v1342_v36  ;;  %v1387_v36 = vld [vmem:[#allocation8 + $0x30] sm:$0xff]  }
  0x53   :  { %1192 = vmatpush3.bf16.msra.mxu1 %v1343_v37  ;;  %1199 = vmatprep.subr.bf16.mxu0 %v1345_v41  ;;  %v1388_v37 = vld [vmem:[#allocation8 + $0x28] sm:$0xff]  }
  0x54   :  { %1221 = vmatprep.subr.bf16.mxu1 %v1346_v42 }
  0x55   :  { %687 = vmatmul.mubr.bf16.vlgmr.msra.gmra.mxu0 %v127_v45 }
  0x56   :  { %1200 = vmatpush3.bf16.msra.mxu0 %v1347_v46  ;;  %727 = vmatmul.mubr.bf16.vlgmr.msra.gmra.mxu1 %v129_v50  ;;  %v1072_v50 = vld [vmem:[%s1616_s2] ss:$0 sm:$0xff] }
  0x57   :  { %1201 = vmatprep.subr.bf16.mxu0 %v1349_v51  ;;  %1222 = vmatpush3.bf16.msra.mxu1 %v1348_v49 }
  0x58   :  { %1223 = vmatprep.subr.bf16.mxu1 %v1350_v53  ;;  %766 = vmatprep.mubr.bf16.mxu0 %v132_v22 }
  0x59   :  { %806 = vmatprep.mubr.bf16.mxu1 %v134_v25 }
  0x5a   :  { %1202 = vmatpush3.bf16.msra.mxu0 %v1351_v54 }
  0x5b   :  { %1203 = vmatprep.subr.bf16.mxu0 %v1353_v56  ;;  %1224 = vmatpush3.bf16.msra.mxu1 %v1352_v55 }
  0x5c   :  { %1225 = vmatprep.subr.bf16.mxu1 %v1354_v57 }
  0x5e   :  { %1204 = vmatpush3.bf16.msra.mxu0 %v1355_v58 }
  0x5f   :  { %1205 = vmatprep.subr.bf16.mxu0 %v1357_v60  ;;  %1226 = vmatpush3.bf16.msra.mxu1 %v1356_v59 }
  0x60   :  { %1227 = vmatprep.subr.bf16.mxu1 %v1358_v61 }
  0x62   :  { %1206 = vmatpush3.bf16.msra.mxu0 %v1359_v62 }
  0x63   :  { %1207 = vmatprep.subr.bf16.mxu0 %v1361_v0  ;;  %1228 = vmatpush3.bf16.msra.mxu1 %v1360_v63 }
  0x64   :  { %1229 = vmatprep.subr.bf16.mxu1 %v1362_v1 }
  0x66   :  { %1208 = vmatpush3.bf16.msra.mxu0 %v1363_v2 }
  0x67   :  { %1209 = vmatprep.subr.bf16.mxu0 %v1365_v4  ;;  %1230 = vmatpush3.bf16.msra.mxu1 %v1364_v3  ;;  %v1515_v3 = vmov 0  }
  0x68   :  { %1231 = vmatprep.subr.bf16.mxu1 %v1366_v5  ;;  %v1392_v5 = vld [vmem:[#allocation8 + $0x8] sm:$0xff]  }
  0x6a   :  { %1210 = vmatpush3.bf16.msra.mxu0 %v1367_v6  ;;  %v1393_v6 = vld [vmem:[#allocation8] sm:$0xff]  }
  0x6b   :  { %1211 = vmatprep.subr.bf16.mxu0 %v1369_v8  ;;  %1232 = vmatpush3.bf16.msra.mxu1 %v1368_v7  ;;  %v1137_v7 = vld [vmem:[%s1618_s4] ss:$0 sm:$0xff]  ;;  %s1516_s4 = smov [#allocation10]  }
  0x6c   :  { %1233 = vmatprep.subr.bf16.mxu1 %v1370_v9  ;;  %s1061_s6 = sshll.u32 %s1516_s4, 4  ;;  %s1062_s6 = int_to_ptr.vmem [resolvable:$true] %s1061_s6 }
  0x6d   :  { %s1478_s24 = scalar_lea.vmem %s1062_s6, 32  ;;  %p1483_p7 = scmp.lt.s32.totalorder %s1062_s6, %s1062_s6 }
  0x6e   :  { %1212 = vmatpush3.bf16.msra.mxu0 %v1371_v10  ;;  %p1479_p6 = scmp.ne.s32.totalorder %s1062_s6, %s1478_s24  ;;  %p1484_p8 = scmp.lt.s32.totalorder %s1478_s24, %s1478_s24 }
  0x6f   :  { %1213 = vmatprep.subr.bf16.mxu0 %v1373_v12  ;;  %1234 = vmatpush3.bf16.msra.mxu1 %v1372_v11 }
  0x70   :  { %1235 = vmatprep.subr.bf16.mxu1 %v1374_v13  ;;  %p1485_p9 = por %p1484_p8, %p1483_p7 }
  0x72   :  { %1214 = vmatpush3.bf16.msra.mxu0 %v1375_v14  ;;  %p1486_p10 = pnand %p1485_p9, %p1479_p6 }
  0x73   :  { %1236 = vmatpush3.bf16.msra.mxu1 %v1376_v16  ;;  %1261 = vmatprep.subr.bf16.mxu0 %v1513_v27 }
  0x74   :  { %1281 = vmatprep.subr.bf16.mxu1 %v1513_v27 }
  0x75   :  { %767 = vmatmul.mubr.bf16.vlgmr.msra.gmra.mxu0 %v131_v21 }
  0x76   :  { %807 = vmatmul.mubr.bf16.vlgmr.msra.gmra.mxu1 %v133_v24  ;;  %1262 = vmatpush3.bf16.msra.mxu0 %v1378_v26 }
  0x77   :  { %1263 = vmatprep.subr.bf16.mxu0 %v1513_v27  ;;  %1277 = vmatprep.mubr.msk.bf16.mxu0 %vm1514_vm0, %v1513_v27 }
  0x78   :  { %1297 = vmatprep.mubr.msk.bf16.mxu1 %vm1514_vm0, %v1513_v27  ;;  %1282 = vmatpush3.bf16.msra.mxu1 %v1386_v35 }
  0x79   :  { %1283 = vmatprep.subr.bf16.mxu1 %v1513_v27 }
  0x7a   :  { %1264 = vmatpush3.bf16.msra.mxu0 %v1379_v28 }
  0x7b   :  { %1265 = vmatprep.subr.bf16.mxu0 %v1513_v27 }
  0x7c   :  { %1284 = vmatpush3.bf16.msra.mxu1 %v1387_v36 }
  0x7d   :  { %1285 = vmatprep.subr.bf16.mxu1 %v1513_v27 }
  0x7e   :  { %1266 = vmatpush3.bf16.msra.mxu0 %v1380_v29 }
  0x7f   :  { %1267 = vmatprep.subr.bf16.mxu0 %v1513_v27 }
  0x80   :  { %1286 = vmatpush3.bf16.msra.mxu1 %v1388_v37 }
  0x81   :  { %1287 = vmatprep.subr.bf16.mxu1 %v1513_v27 }
  0x82   :  { %1268 = vmatpush3.bf16.msra.mxu0 %v1381_v30 }
  0x83   :  { %1269 = vmatprep.subr.bf16.mxu0 %v1513_v27 }
  0x84   :  { %1288 = vmatpush3.bf16.msra.mxu1 %v1389_v38 }
  0x85   :  { %1289 = vmatprep.subr.bf16.mxu1 %v1513_v27 }
  0x86   :  { %1270 = vmatpush3.bf16.msra.mxu0 %v1382_v31 }
  0x87   :  { %1271 = vmatprep.subr.bf16.mxu0 %v1513_v27 }
  0x88   :  { %1290 = vmatpush3.bf16.msra.mxu1 %v1390_v39 }
  0x89   :  { %1291 = vmatprep.subr.bf16.mxu1 %v1513_v27 }
  0x8a   :  { %1272 = vmatpush3.bf16.msra.mxu0 %v1383_v32 }
  0x8b   :  { %1273 = vmatprep.subr.bf16.mxu0 %v1513_v27 }
  0x8c   :  { %1292 = vmatpush3.bf16.msra.mxu1 %v1391_v40 }
  0x8d   :  { %1293 = vmatprep.subr.bf16.mxu1 %v1513_v27 }
  0x8e   :  { %1274 = vmatpush3.bf16.msra.mxu0 %v1384_v33 }
  0x8f   :  { %1275 = vmatprep.subr.bf16.mxu0 %v1513_v27 }
  0x90   :  { %1294 = vmatpush3.bf16.msra.mxu1 %v1392_v5 }
  0x91   :  { %1295 = vmatprep.subr.bf16.mxu1 %v1513_v27 }
  0x92   :  { %1276 = vmatpush3.bf16.msra.mxu0 %v1385_v34 }
  0x94   :  { %1296 = vmatpush3.bf16.msra.mxu1 %v1393_v6 }
 0x115   :  { %v1171_v41 = vpop.f32.mrf.mxu0 }
 0x116   :  { %v1193_v42 = vpop.f32.mrf.mxu1 }
 0x117   :  { %v1172_v43 = vpop.f32.mrf.mxu0 }
 0x118   :  { %v1194_v44 = vpop.f32.mrf.mxu1  ;;  %v1173_v49 = vadd.f32 %v1172_v43, %v1171_v41 }
 0x119   :  { %v1174_v45 = vpop.f32.mrf.mxu0  ;;  %v1195_v52 = vadd.f32 %v1194_v44, %v1193_v42 }
 0x11a   :  { %v1196_v46 = vpop.f32.mrf.mxu1  ;;  %v689_v51 = vadd.f32 %v1173_v49, %v1072_v50 }
 0x11b   :  { %v1175_v47 = vpop.f32.mrf.mxu0 }
 0x11c   :  { %v1197_v48 = vpop.f32.mrf.mxu1  ;;  %v729_v56 = vadd.f32 %v1195_v52, %v689_v51 }
 0x135   :  { %v1215_v53 = vpop.f32.mrf.mxu0 }
 0x136   :  { %v1237_v54 = vpop.f32.mrf.mxu1 }
 0x137   :  { %v1216_v55 = vpop.f32.mrf.mxu0 }
 0x138   :  { %v1217_v57 = vadd.f32 %v1216_v55, %v1215_v53  ;;  %v1238_v58 = vpop.f32.mrf.mxu1 }
 0x139   :  { %v1218_v59 = vpop.f32.mrf.mxu0  ;;  %v1239_v61 = vadd.f32 %v1238_v58, %v1237_v54 }
 0x13a   :  { %v769_v60 = vadd.f32 %v1217_v57, %v729_v56  ;;  %v1240_v62 = vpop.f32.mrf.mxu1 }
 0x13b   :  { %v1219_v63 = vpop.f32.mrf.mxu0 }
 0x13c   :  { %v809_v0 = vadd.f32 %v1239_v61, %v769_v60  ;;  %v1241_v1 = vpop.f32.mrf.mxu1 }
 0x13e   :  { %v814_v2 = vpack.c.bf16 %v809_v0, %v809_v0 }
 0x140   :  { %v815_v4 = vmax.bf16 %v1515_v3, %v814_v2 }
 0x142   :  { %1278 = vmatmul.mubr.bf16.vlgmr.msra.gmra.mxu0 %v815_v4 }
 0x202   :  { %v921_v8 = vpop.f32.mrf.mxu0 }
 0x203   :  { %v922_v9 = vadd.f32 %v1137_v7, %v921_v8 }
 0x204   :  { %v1279_v10 = vpop.f32.mrf.mxu0 }
 0x205   :  { %v927_v11 = vpack.c.bf16 %v922_v9, %v922_v9 }
 0x206   :  { %v924_v12 = vpop.f32.mrf.mxu0 }
 0x207   :  { %v928_v13 = vmax.bf16 %v1515_v3, %v927_v11 }
 0x208   :  { %v1280_v14 = vpop.f32.mrf.mxu0 }
 0x209   :  { %1298 = vmatmul.mubr.bf16.vlgmr.msra.gmra.mxu1 %v928_v13 }
 0x2c9   :  { %v1034_v16 = vpop.f32.mrf.mxu1 }
 0x2ca   :  { %v1035_v17 = vadd.f32 %v1146_v15, %v1034_v16 }
 0x2cb   :  { %v1299_v18 = vpop.f32.mrf.mxu1 }
 0x2cc   :  { %v1041_v19 = vsel %vm1040_vm1, %v1035_v17, -inf }
 0x2cd   :  { %1042 = vmax.xlane.f32.xlu0 %v1041_v19  ;;  %v1037_v20 = vpop.f32.mrf.mxu1 }
 0x2cf   :  { %v1300_v21 = vpop.f32.mrf.mxu1 }
 0x356   :  { %v1043_v22 = vpop.xlane.xlu0 %1042 }
 0x357   :  { %v1044_v23 = vsub.f32 %v1035_v17, %v1043_v22 }
 0x359   :  { %v1045_v24 = vmul.f32 1.442695, %v1044_v23 }
 0x35b   :  { %1394 = vpow2.f32 %v1045_v24 }
 0x368   :  { %v1395_v25 = vpop.eup %1394 }
 0x369   :  { %v1047_v26 = vsel %vm1040_vm1, %v1395_v25, 0.0 }
 0x36a   :  { %1048 = vadd.xlane.f32.xlu0 %v1047_v26 }
 0x3f3   :  { %v1049_v27 = vpop.xlane.xlu0 %1048 }
 0x3f4   :  { %1396 = vlog2.f32 %v1049_v27 }
 0x401   :  { %v1397_v28 = vpop.eup %1396 }
 0x402   :  { %v1051_v29 = vmul.f32 0.6931472, %v1397_v28 }
 0x404   :  { %v1052_v30 = vadd.f32 %v1051_v29, %v1043_v22 }
 0x406   :  { %v1053_v31 = vsub.f32 %v1035_v17, %v1052_v30 }
 0x408   :  { %1054 = vst [vmem:[#allocation10] sm:$0x3] %v1053_v31 }
 0x409   :  { %1489 = shalt.err (!%p1486_p10)
}
 0x40a   :  { %1064 = dma.vmem_to_hbm [thread:$0]  %s1062_s6, 32, %s1621_s7, [#allocation4]  }
 0x40b   :  { %1504 = dma.done.wait [#allocation4], 32  }
 0x40c   :  { %1505 = vsyncadd [#allocation4], 4294967264 }
 0x40d   :  { %1068 = vsyncpa [#allocation3], 1 }
 0x40e   :  { %1069 = vsyncpa [#allocation6], 1 }
 0x40f   :  { %1070 = vsyncpa [#allocation9], 1 }
 0x410   :  { %1071 = vsyncpa [#allocation4], 1 }

// kernel: tpu_custom_call.1
= control target key start
LH: loop header
LB: loop body
LE: loop exit
PB: predicated region body
PF: predicated region fallthrough
CT: control target
= control target key end

     0   :  { %12 = vsyncpa [#allocation3], 0  ;;  %s1614_s0 = inlined_call_operand.hbm [shape: f32[2,1024], index: 0, kind: input, shape index: {}]   ;;  %s1615_s1 = inlined_call_operand.hbm [shape: bf16[1024,128], index: 1, kind: input, shape index: {}]   ;;  %s1616_s2 = inlined_call_operand.vmem [shape: f32[1,128], index: 2, kind: input, shape index: {}]   ;;  %s1617_s3 = inlined_call_operand.hbm [shape: bf16[128,128], index: 3, kind: input, shape index: {}]   ;;  %s1618_s4 = inlined_call_operand.vmem [shape: f32[1,128], index: 4, kind: input, shape index: {}]   ;;  %s1619_s5 = inlined_call_operand.hbm [shape: bf16[128,128], index: 5, kind: input, shape index: {}]   ;;  %s1620_s6 = inlined_call_operand.vmem [shape: f32[1,128], index: 6, kind: input, shape index: {}]   ;;  %s1621_s7 = inlined_call_operand.hbm [shape: f32[2,128], index: 7, kind: output, shape index: {}]  }
   0x1   :  { %13 = vsyncpa [#allocation6], 0 }
   0x2   :  { %14 = vsyncpa [#allocation9], 0 }
   0x3   :  { %15 = vsyncpa [#allocation4], 0  ;;  %s1506_s24 = smov [#allocation5]  }
   0x4   :  { %s31_s25 = sshll.u32 %s1506_s24, 4  ;;  %s32_s25 = int_to_ptr.vmem [resolvable:$true] %s31_s25 }
   0x5   :  { %s1406_s26 = scalar_lea.vmem %s32_s25, 8192  ;;  %p1411_p1 = scmp.lt.s32.totalorder %s32_s25, %s32_s25 }
   0x6   :  { %p1407_p0 = scmp.ne.s32.totalorder %s32_s25, %s1406_s26  ;;  %p1412_p2 = scmp.lt.s32.totalorder %s1406_s26, %s1406_s26 }
   0x8   :  { %p1413_p3 = por %p1412_p2, %p1411_p1 }
   0xa   :  { %p1414_p4 = pnand %p1413_p3, %p1407_p0 }
   0xc   :  { %1417 = shalt.err (!%p1414_p4)
}
   0xd   :  { %s1507_s27 = smov 64   ;;  %s1508_s28 = smov 4  }
   0xe   :  { %37 = dma.hbm_to_vmem [thread:$0]  %s1615_s1, 8192, %s32_s25, [#allocation6], %s1507_s27, %s1507_s27, %s1508_s28  }
   0xf   :  { %s1509_s8 = smov [#allocation2]   ;;  %s1510_s10 = smov [#allocation7]  }
  0x10   :  { %s22_s9 = sshll.u32 %s1509_s8, 4  ;;  %s45_s11 = sshll.u32 %s1510_s10, 4  ;;  %s23_s9 = int_to_ptr.vmem [resolvable:$true] %s22_s9  ;;  %s46_s11 = int_to_ptr.vmem [resolvable:$true] %s45_s11 }
  0x11   :  { %s1426_s12 = scalar_lea.vmem %s23_s9, 256  ;;  %p1431_p6 = scmp.lt.s32.totalorder %s23_s9, %s23_s9 }
  0x12   :  { %p1427_p5 = scmp.ne.s32.totalorder %s23_s9, %s1426_s12  ;;  %p1432_p7 = scmp.lt.s32.totalorder %s1426_s12, %s1426_s12 }
  0x14   :  { %p1433_p8 = por %p1432_p7, %p1431_p6 }
  0x16   :  { %p1434_p9 = pnand %p1433_p8, %p1427_p5 }
  0x18   :  { %1437 = shalt.err (!%p1434_p9)
}
  0x19   :  { %25 = dma.hbm_to_vmem [thread:$0]  %s1614_s0, 256, %s23_s9, [#allocation3]  }
  0x1a   :  { %s1446_s15 = scalar_lea.vmem %s46_s11, 1024  ;;  %p1451_p11 = scmp.lt.s32.totalorder %s46_s11, %s46_s11 }
  0x1b   :  { %p1447_p10 = scmp.ne.s32.totalorder %s46_s11, %s1446_s15  ;;  %p1452_p12 = scmp.lt.s32.totalorder %s1446_s15, %s1446_s15 }
  0x1d   :  { %p1453_p13 = por %p1452_p12, %p1451_p11 }
  0x1f   :  { %p1454_p0 = pnand %p1453_p13, %p1447_p10 }
  0x21   :  { %1457 = shalt.err (!%p1454_p0)
}
  0x22   :  { %51 = dma.hbm_to_vmem [thread:$0]  %s1617_s3, 1024, %s46_s11, [#allocation6], %s1507_s27, %s1507_s27, %s1508_s28  }
  0x23   :  { %s1511_s17 = smov [#allocation8]  }
  0x24   :  { %s59_s18 = sshll.u32 %s1511_s17, 4  ;;  %s60_s18 = int_to_ptr.vmem [resolvable:$true] %s59_s18 }
  0x25   :  { %s1466_s19 = scalar_lea.vmem %s60_s18, 1024  ;;  %p1471_p2 = scmp.lt.s32.totalorder %s60_s18, %s60_s18 }
  0x26   :  { %p1467_p1 = scmp.ne.s32.totalorder %s60_s18, %s1466_s19  ;;  %p1472_p3 = scmp.lt.s32.totalorder %s1466_s19, %s1466_s19 }
  0x28   :  { %p1473_p4 = por %p1472_p3, %p1471_p2 }
  0x2a   :  { %p1474_p5 = pnand %p1473_p4, %p1467_p1 }
  0x2c   :  { %1477 = shalt.err (!%p1474_p5)
}
  0x2d   :  { %65 = dma.hbm_to_vmem [thread:$0]  %s1619_s5, 1024, %s60_s18, [#allocation9], %s1507_s27, %s1507_s27, %s1508_s28  }
  0x2e   :  { %1498 = dma.done.wait [#allocation3], 256  }
  0x2f   :  { %1499 = vsyncadd [#allocation3], 4294967040 }
  0x30   :  { %1500 = dma.done.wait [#allocation6], 9216  }
  0x31   :  { %1501 = vsyncadd [#allocation6], 4294958080 }
  0x32   :  { %1502 = dma.done.wait [#allocation9], 1024  }
  0x33   :  { %1503 = vsyncadd [#allocation9], 4294966272  ;;  %v1312_v0 = vld [vmem:[#allocation5 + $0x78] sm:$0xff]   ;;  %v1316_v4 = vld [vmem:[#allocation5 + $0x70] sm:$0xff]   ;;  %v1512_v22 = vmov 1983009808   ;;  %v89_v24 = vlaneseq }
  0x34   :  { %v1313_v1 = vld [vmem:[#allocation5 + $0xf8] sm:$0xff]   ;;  %1155 = vmatprep.subr.bf16.mxu0 %v1312_v0  ;;  %v1317_v5 = vld [vmem:[#allocation5 + $0xf0] sm:$0xff]   ;;  %v1320_v8 = vld [vmem:[#allocation5 + $0x68] sm:$0xff]   ;;  %v87_v23 = vunpack.c.l.s4 %v1512_v22  ;;  %vm1514_vm0 = vmmov 0   ;;  %vm1040_vm1 = vcmask 1041408  }
  0x35   :  { %v1314_v2 = vld [vmem:[#allocation5 + $0x38] sm:$0xff]   ;;  %1177 = vmatprep.subr.bf16.mxu1 %v1313_v1  ;;  %v1318_v6 = vld [vmem:[#allocation5 + $0x30] sm:$0xff]   ;;  %v1321_v9 = vld [vmem:[#allocation5 + $0xe8] sm:$0xff]   ;;  %v90_v30 = vshrl.u32 %v89_v24, 7 }
  0x36   :  { %v1315_v3 = vld [vmem:[#allocation5 + $0xb8] sm:$0xff]   ;;  %1156 = vmatpush3.bf16.msra.mxu0 %v1314_v2  ;;  %v1319_v7 = vld [vmem:[#allocation5 + $0xb0] sm:$0xff]   ;;  %v1322_v10 = vld [vmem:[#allocation5 + $0x28] sm:$0xff]   ;;  %v88_v29 = vunpack.c.0.s8 %v87_v23 }
  0x37   :  { %1178 = vmatpush3.bf16.msra.mxu1 %v1315_v3  ;;  %1157 = vmatprep.subr.bf16.mxu0 %v1316_v4  ;;  %v1323_v11 = vld [vmem:[#allocation5 + $0xa8] sm:$0xff]   ;;  %v1324_v12 = vld [vmem:[#allocation5 + $0x60] sm:$0xff]   ;;  %v1328_v16 = vld [vmem:[#allocation5 + $0x58] sm:$0xff]  }
  0x38   :  { %1179 = vmatprep.subr.bf16.mxu1 %v1317_v5  ;;  %v1325_v13 = vld [vmem:[#allocation5 + $0xe0] sm:$0xff]   ;;  %v1329_v17 = vld [vmem:[#allocation5 + $0xd8] sm:$0xff]   ;;  %v1332_v20 = vld [vmem:[#allocation5 + $0x50] sm:$0xff]   ;;  %v1578_v35 = vsub.s32 %v88_v29, %v90_v30 }
  0x39   :  { %v1326_v14 = vld [vmem:[#allocation5 + $0x20] sm:$0xff]   ;;  %v1330_v18 = vld [vmem:[#allocation5 + $0x18] sm:$0xff]   ;;  %v1333_v21 = vld [vmem:[#allocation5 + $0xd0] sm:$0xff]  }
  0x3a   :  { %1158 = vmatpush3.bf16.msra.mxu0 %v1318_v6  ;;  %v1327_v15 = vld [vmem:[#allocation5 + $0xa0] sm:$0xff]   ;;  %v1331_v19 = vld [vmem:[#allocation5 + $0x98] sm:$0xff]   ;;  %v1334_v25 = vld [vmem:[#allocation5 + $0x10] sm:$0xff]  }
  0x3b   :  { %1180 = vmatpush3.bf16.msra.mxu1 %v1319_v7  ;;  %1159 = vmatprep.subr.bf16.mxu0 %v1320_v8  ;;  %v1335_v26 = vld [vmem:[#allocation5 + $0x90] sm:$0xff]   ;;  %v1336_v27 = vld [vmem:[#allocation5 + $0x48] sm:$0xff]   ;;  %v1340_v33 = vld [vmem:[#allocation5 + $0x40] sm:$0xff]  }
  0x3c   :  { %1181 = vmatprep.subr.bf16.mxu1 %v1321_v9  ;;  %v1337_v28 = vld [vmem:[#allocation5 + $0xc8] sm:$0xff]   ;;  %v1341_v34 = vld [vmem:[#allocation5 + $0xc0] sm:$0xff]   ;;  %v81_v38 = vld [vmem:[#allocation2] sm:$0xff] }
  0x3d   :  { %v1338_v31 = vld [vmem:[#allocation5 + $0x8] sm:$0xff]   ;;  %v1342_v36 = vld [vmem:[#allocation5] sm:$0xff]   ;;  %v92_v39 = vrot.slane %v81_v38, %v1578_v35  ;;  %v85_v40 = vcombine.high %v81_v38, %v81_v38  ;;  %v1345_v41 = vld [vmem:[#allocation5 + $0x178] sm:$0xff]  }
  0x3e   :  { %1160 = vmatpush3.bf16.msra.mxu0 %v1322_v10  ;;  %v1339_v32 = vld [vmem:[#allocation5 + $0x88] sm:$0xff]   ;;  %v1343_v37 = vld [vmem:[#allocation5 + $0x80] sm:$0xff]   ;;  %v1346_v42 = vld [vmem:[#allocation5 + $0x1f8] sm:$0xff]  }
  0x3f   :  { %1182 = vmatpush3.bf16.msra.mxu1 %v1323_v11  ;;  %1161 = vmatprep.subr.bf16.mxu0 %v1324_v12  ;;  %v100_v43 = vcombine.high %v92_v39, %v92_v39  ;;  %v99_v44 = vrot.slane %v85_v40, %v1578_v35  ;;  %v127_v45 = vpack.c.bf16 %v92_v39, %v92_v39  ;;  %v1347_v46 = vld [vmem:[#allocation5 + $0x138] sm:$0xff]   ;;  %v1349_v51 = vld [vmem:[#allocation5 + $0x170] sm:$0xff]   ;;  %v1353_v56 = vld [vmem:[#allocation5 + $0x168] sm:$0xff]  }
  0x40   :  { %1183 = vmatprep.subr.bf16.mxu1 %v1325_v13  ;;  %v1348_v49 = vld [vmem:[#allocation5 + $0x1b8] sm:$0xff]   ;;  %v1350_v53 = vld [vmem:[#allocation5 + $0x1f0] sm:$0xff]   ;;  %v1354_v57 = vld [vmem:[#allocation5 + $0x1e8] sm:$0xff]  }
  0x41   :  { %v128_v47 = vpack.c.bf16 %v100_v43, %v100_v43  ;;  %v101_v48 = vcombine.high %v99_v44, %v99_v44  ;;  %v129_v50 = vpack.c.bf16 %v99_v44, %v99_v44  ;;  %v1351_v54 = vld [vmem:[#allocation5 + $0x130] sm:$0xff]   ;;  %v1355_v58 = vld [vmem:[#allocation5 + $0x128] sm:$0xff]   ;;  %v1357_v60 = vld [vmem:[#allocation5 + $0x160] sm:$0xff]  }
  0x42   :  { %1162 = vmatpush3.bf16.msra.mxu0 %v1326_v14  ;;  %v1352_v55 = vld [vmem:[#allocation5 + $0x1b0] sm:$0xff]   ;;  %v1356_v59 = vld [vmem:[#allocation5 + $0x1a8] sm:$0xff]   ;;  %v1358_v61 = vld [vmem:[#allocation5 + $0x1e0] sm:$0xff]  }
  0x43   :  { %1184 = vmatpush3.bf16.msra.mxu1 %v1327_v15  ;;  %1163 = vmatprep.subr.bf16.mxu0 %v1328_v16  ;;  %v130_v52 = vpack.c.bf16 %v101_v48, %v101_v48  ;;  %v1359_v62 = vld [vmem:[#allocation5 + $0x120] sm:$0xff]   ;;  %v1361_v0 = vld [vmem:[#allocation5 + $0x158] sm:$0xff]   ;;  %v1365_v4 = vld [vmem:[#allocation5 + $0x150] sm:$0xff]  }
  0x44   :  { %1185 = vmatprep.subr.bf16.mxu1 %v1329_v17  ;;  %686 = vmatprep.mubr.bf16.mxu0 %v128_v47  ;;  %v1360_v63 = vld [vmem:[#allocation5 + $0x1a0] sm:$0xff]   ;;  %v1362_v1 = vld [vmem:[#allocation5 + $0x1d8] sm:$0xff]   ;;  %v1366_v5 = vld [vmem:[#allocation5 + $0x1d0] sm:$0xff]  }
  0x45   :  { %726 = vmatprep.mubr.bf16.mxu1 %v130_v52  ;;  %v1363_v2 = vld [vmem:[#allocation5 + $0x118] sm:$0xff]   ;;  %v1367_v6 = vld [vmem:[#allocation5 + $0x110] sm:$0xff]   ;;  %v1369_v8 = vld [vmem:[#allocation5 + $0x148] sm:$0xff]  }
  0x46   :  { %1164 = vmatpush3.bf16.msra.mxu0 %v1330_v18  ;;  %v1364_v3 = vld [vmem:[#allocation5 + $0x198] sm:$0xff]   ;;  %v1368_v7 = vld [vmem:[#allocation5 + $0x190] sm:$0xff]   ;;  %v1370_v9 = vld [vmem:[#allocation5 + $0x1c8] sm:$0xff]  }
  0x47   :  { %1186 = vmatpush3.bf16.msra.mxu1 %v1331_v19  ;;  %1165 = vmatprep.subr.bf16.mxu0 %v1332_v20  ;;  %v1371_v10 = vld [vmem:[#allocation5 + $0x108] sm:$0xff]   ;;  %v1373_v12 = vld [vmem:[#allocation5 + $0x140] sm:$0xff]   ;;  %v82_v15 = vld [vmem:[#allocation2 + $0x8] sm:$0xff] }
  0x48   :  { %1187 = vmatprep.subr.bf16.mxu1 %v1333_v21  ;;  %v1372_v11 = vld [vmem:[#allocation5 + $0x188] sm:$0xff]   ;;  %v1374_v13 = vld [vmem:[#allocation5 + $0x1c0] sm:$0xff]   ;;  %v109_v17 = vrot.slane %v82_v15, %v1578_v35  ;;  %v102_v18 = vcombine.high %v82_v15, %v82_v15  ;;  %v1390_v39 = vld [vmem:[#allocation8 + $0x18] sm:$0xff]  }
  0x49   :  { %v1375_v14 = vld [vmem:[#allocation5 + $0x100] sm:$0xff]   ;;  %v1380_v29 = vld [vmem:[#allocation7 + $0x28] sm:$0xff]   ;;  %v1391_v40 = vld [vmem:[#allocation8 + $0x10] sm:$0xff]  }
  0x4a   :  { %1166 = vmatpush3.bf16.msra.mxu0 %v1334_v25  ;;  %v1376_v16 = vld [vmem:[#allocation5 + $0x180] sm:$0xff]   ;;  %v117_v19 = vcombine.high %v109_v17, %v109_v17  ;;  %v116_v20 = vrot.slane %v102_v18, %v1578_v35  ;;  %v131_v21 = vpack.c.bf16 %v109_v17, %v109_v17  ;;  %v1386_v35 = vld [vmem:[#allocation8 + $0x38] sm:$0xff]   ;;  %v1146_v15 = vld [vmem:[%s1620_s6] ss:$0 sm:$0xff] }
  0x4b   :  { %1188 = vmatpush3.bf16.msra.mxu1 %v1335_v26  ;;  %1167 = vmatprep.subr.bf16.mxu0 %v1336_v27  ;;  %v1378_v26 = vld [vmem:[#allocation7 + $0x38] sm:$0xff]   ;;  %v1513_v27 = vmov 0.0   ;;  %v1381_v30 = vld [vmem:[#allocation7 + $0x20] sm:$0xff]  }
  0x4c   :  { %1189 = vmatprep.subr.bf16.mxu1 %v1337_v28  ;;  %v132_v22 = vpack.c.bf16 %v117_v19, %v117_v19  ;;  %v118_v23 = vcombine.high %v116_v20, %v116_v20  ;;  %v133_v24 = vpack.c.bf16 %v116_v20, %v116_v20  ;;  %v1379_v28 = vld [vmem:[#allocation7 + $0x30] sm:$0xff]   ;;  %v1389_v38 = vld [vmem:[#allocation8 + $0x20] sm:$0xff]  }
  0x4e   :  { %1168 = vmatpush3.bf16.msra.mxu0 %v1338_v31  ;;  %v134_v25 = vpack.c.bf16 %v118_v23, %v118_v23  ;;  %v1382_v31 = vld [vmem:[#allocation7 + $0x18] sm:$0xff]  }
  0x4f   :  { %1190 = vmatpush3.bf16.msra.mxu1 %v1339_v32  ;;  %1169 = vmatprep.subr.bf16.mxu0 %v1340_v33  ;;  %v1383_v32 = vld [vmem:[#allocation7 + $0x10] sm:$0xff]   ;;  %v1384_v33 = vld [vmem:[#allocation7 + $0x8] sm:$0xff]  }
  0x50   :  { %1191 = vmatprep.subr.bf16.mxu1 %v1341_v34  ;;  %v1385_v34 = vld [vmem:[#allocation7] sm:$0xff]  }
  0x52   :  { %1170 = vmatpush3.bf16.msra.mxu0 %v1342_v36  ;;  %v1387_v36 = vld [vmem:[#allocation8 + $0x30] sm:$0xff]  }
  0x53   :  { %1192 = vmatpush3.bf16.msra.mxu1 %v1343_v37  ;;  %1199 = vmatprep.subr.bf16.mxu0 %v1345_v41  ;;  %v1388_v37 = vld [vmem:[#allocation8 + $0x28] sm:$0xff]  }
  0x54   :  { %1221 = vmatprep.subr.bf16.mxu1 %v1346_v42 }
  0x55   :  { %687 = vmatmul.mubr.bf16.vlgmr.msra.gmra.mxu0 %v127_v45 }
  0x56   :  { %1200 = vmatpush3.bf16.msra.mxu0 %v1347_v46  ;;  %727 = vmatmul.mubr.bf16.vlgmr.msra.gmra.mxu1 %v129_v50  ;;  %v1072_v50 = vld [vmem:[%s1616_s2] ss:$0 sm:$0xff] }
  0x57   :  { %1201 = vmatprep.subr.bf16.mxu0 %v1349_v51  ;;  %1222 = vmatpush3.bf16.msra.mxu1 %v1348_v49 }
  0x58   :  { %1223 = vmatprep.subr.bf16.mxu1 %v1350_v53  ;;  %766 = vmatprep.mubr.bf16.mxu0 %v132_v22 }
  0x59   :  { %806 = vmatprep.mubr.bf16.mxu1 %v134_v25 }
  0x5a   :  { %1202 = vmatpush3.bf16.msra.mxu0 %v1351_v54 }
  0x5b   :  { %1203 = vmatprep.subr.bf16.mxu0 %v1353_v56  ;;  %1224 = vmatpush3.bf16.msra.mxu1 %v1352_v55 }
  0x5c   :  { %1225 = vmatprep.subr.bf16.mxu1 %v1354_v57 }
  0x5e   :  { %1204 = vmatpush3.bf16.msra.mxu0 %v1355_v58 }
  0x5f   :  { %1205 = vmatprep.subr.bf16.mxu0 %v1357_v60  ;;  %1226 = vmatpush3.bf16.msra.mxu1 %v1356_v59 }
  0x60   :  { %1227 = vmatprep.subr.bf16.mxu1 %v1358_v61 }
  0x62   :  { %1206 = vmatpush3.bf16.msra.mxu0 %v1359_v62 }
  0x63   :  { %1207 = vmatprep.subr.bf16.mxu0 %v1361_v0  ;;  %1228 = vmatpush3.bf16.msra.mxu1 %v1360_v63 }
  0x64   :  { %1229 = vmatprep.subr.bf16.mxu1 %v1362_v1 }
  0x66   :  { %1208 = vmatpush3.bf16.msra.mxu0 %v1363_v2 }
  0x67   :  { %1209 = vmatprep.subr.bf16.mxu0 %v1365_v4  ;;  %1230 = vmatpush3.bf16.msra.mxu1 %v1364_v3  ;;  %v1515_v3 = vmov 0  }
  0x68   :  { %1231 = vmatprep.subr.bf16.mxu1 %v1366_v5  ;;  %v1392_v5 = vld [vmem:[#allocation8 + $0x8] sm:$0xff]  }
  0x6a   :  { %1210 = vmatpush3.bf16.msra.mxu0 %v1367_v6  ;;  %v1393_v6 = vld [vmem:[#allocation8] sm:$0xff]  }
  0x6b   :  { %1211 = vmatprep.subr.bf16.mxu0 %v1369_v8  ;;  %1232 = vmatpush3.bf16.msra.mxu1 %v1368_v7  ;;  %v1137_v7 = vld [vmem:[%s1618_s4] ss:$0 sm:$0xff]  ;;  %s1516_s4 = smov [#allocation10]  }
  0x6c   :  { %1233 = vmatprep.subr.bf16.mxu1 %v1370_v9  ;;  %s1061_s6 = sshll.u32 %s1516_s4, 4  ;;  %s1062_s6 = int_to_ptr.vmem [resolvable:$true] %s1061_s6 }
  0x6d   :  { %s1478_s24 = scalar_lea.vmem %s1062_s6, 32  ;;  %p1483_p7 = scmp.lt.s32.totalorder %s1062_s6, %s1062_s6 }
  0x6e   :  { %1212 = vmatpush3.bf16.msra.mxu0 %v1371_v10  ;;  %p1479_p6 = scmp.ne.s32.totalorder %s1062_s6, %s1478_s24  ;;  %p1484_p8 = scmp.lt.s32.totalorder %s1478_s24, %s1478_s24 }
  0x6f   :  { %1213 = vmatprep.subr.bf16.mxu0 %v1373_v12  ;;  %1234 = vmatpush3.bf16.msra.mxu1 %v1372_v11 }
  0x70   :  { %1235 = vmatprep.subr.bf16.mxu1 %v1374_v13  ;;  %p1485_p9 = por %p1484_p8, %p1483_p7 }
  0x72   :  { %1214 = vmatpush3.bf16.msra.mxu0 %v1375_v14  ;;  %p1486_p10 = pnand %p1485_p9, %p1479_p6 }
  0x73   :  { %1236 = vmatpush3.bf16.msra.mxu1 %v1376_v16  ;;  %1261 = vmatprep.subr.bf16.mxu0 %v1513_v27 }
  0x74   :  { %1281 = vmatprep.subr.bf16.mxu1 %v1513_v27 }
  0x75   :  { %767 = vmatmul.mubr.bf16.vlgmr.msra.gmra.mxu0 %v131_v21 }
  0x76   :  { %807 = vmatmul.mubr.bf16.vlgmr.msra.gmra.mxu1 %v133_v24  ;;  %1262 = vmatpush3.bf16.msra.mxu0 %v1378_v26 }
  0x77   :  { %1263 = vmatprep.subr.bf16.mxu0 %v1513_v27  ;;  %1277 = vmatprep.mubr.msk.bf16.mxu0 %vm1514_vm0, %v1513_v27 }
  0x78   :  { %1297 = vmatprep.mubr.msk.bf16.mxu1 %vm1514_vm0, %v1513_v27  ;;  %1282 = vmatpush3.bf16.msra.mxu1 %v1386_v35 }
  0x79   :  { %1283 = vmatprep.subr.bf16.mxu1 %v1513_v27 }
  0x7a   :  { %1264 = vmatpush3.bf16.msra.mxu0 %v1379_v28 }
  0x7b   :  { %1265 = vmatprep.subr.bf16.mxu0 %v1513_v27 }
  0x7c   :  { %1284 = vmatpush3.bf16.msra.mxu1 %v1387_v36 }
  0x7d   :  { %1285 = vmatprep.subr.bf16.mxu1 %v1513_v27 }
  0x7e   :  { %1266 = vmatpush3.bf16.msra.mxu0 %v1380_v29 }
  0x7f   :  { %1267 = vmatprep.subr.bf16.mxu0 %v1513_v27 }
  0x80   :  { %1286 = vmatpush3.bf16.msra.mxu1 %v1388_v37 }
  0x81   :  { %1287 = vmatprep.subr.bf16.mxu1 %v1513_v27 }
  0x82   :  { %1268 = vmatpush3.bf16.msra.mxu0 %v1381_v30 }
  0x83   :  { %1269 = vmatprep.subr.bf16.mxu0 %v1513_v27 }
  0x84   :  { %1288 = vmatpush3.bf16.msra.mxu1 %v1389_v38 }
  0x85   :  { %1289 = vmatprep.subr.bf16.mxu1 %v1513_v27 }
  0x86   :  { %1270 = vmatpush3.bf16.msra.mxu0 %v1382_v31 }
  0x87   :  { %1271 = vmatprep.subr.bf16.mxu0 %v1513_v27 }
  0x88   :  { %1290 = vmatpush3.bf16.msra.mxu1 %v1390_v39 }
  0x89   :  { %1291 = vmatprep.subr.bf16.mxu1 %v1513_v27 }
  0x8a   :  { %1272 = vmatpush3.bf16.msra.mxu0 %v1383_v32 }
  0x8b   :  { %1273 = vmatprep.subr.bf16.mxu0 %v1513_v27 }
  0x8c   :  { %1292 = vmatpush3.bf16.msra.mxu1 %v1391_v40 }
  0x8d   :  { %1293 = vmatprep.subr.bf16.mxu1 %v1513_v27 }
  0x8e   :  { %1274 = vmatpush3.bf16.msra.mxu0 %v1384_v33 }
  0x8f   :  { %1275 = vmatprep.subr.bf16.mxu0 %v1513_v27 }
  0x90   :  { %1294 = vmatpush3.bf16.msra.mxu1 %v1392_v5 }
  0x91   :  { %1295 = vmatprep.subr.bf16.mxu1 %v1513_v27 }
  0x92   :  { %1276 = vmatpush3.bf16.msra.mxu0 %v1385_v34 }
  0x94   :  { %1296 = vmatpush3.bf16.msra.mxu1 %v1393_v6 }
 0x115   :  { %v1171_v41 = vpop.f32.mrf.mxu0 }
 0x116   :  { %v1193_v42 = vpop.f32.mrf.mxu1 }
 0x117   :  { %v1172_v43 = vpop.f32.mrf.mxu0 }
 0x118   :  { %v1194_v44 = vpop.f32.mrf.mxu1  ;;  %v1173_v49 = vadd.f32 %v1172_v43, %v1171_v41 }
 0x119   :  { %v1174_v45 = vpop.f32.mrf.mxu0  ;;  %v1195_v52 = vadd.f32 %v1194_v44, %v1193_v42 }
 0x11a   :  { %v1196_v46 = vpop.f32.mrf.mxu1  ;;  %v689_v51 = vadd.f32 %v1173_v49, %v1072_v50 }
 0x11b   :  { %v1175_v47 = vpop.f32.mrf.mxu0 }
 0x11c   :  { %v1197_v48 = vpop.f32.mrf.mxu1  ;;  %v729_v56 = vadd.f32 %v1195_v52, %v689_v51 }
 0x135   :  { %v1215_v53 = vpop.f32.mrf.mxu0 }
 0x136   :  { %v1237_v54 = vpop.f32.mrf.mxu1 }
 0x137   :  { %v1216_v55 = vpop.f32.mrf.mxu0 }
 0x138   :  { %v1217_v57 = vadd.f32 %v1216_v55, %v1215_v53  ;;  %v1238_v58 = vpop.f32.mrf.mxu1 }
 0x139   :  { %v1218_v59 = vpop.f32.mrf.mxu0  ;;  %v1239_v61 = vadd.f32 %v1238_v58, %v1237_v54 }
 0x13a   :  { %v769_v60 = vadd.f32 %v1217_v57, %v729_v56  ;;  %v1240_v62 = vpop.f32.mrf.mxu1 }
 0x13b   :  { %v1219_v63 = vpop.f32.mrf.mxu0 }
 0x13c   :  { %v809_v0 = vadd.f32 %v1239_v61, %v769_v60  ;;  %v1241_v1 = vpop.f32.mrf.mxu1 }
 0x13e   :  { %v814_v2 = vpack.c.bf16 %v809_v0, %v809_v0 }
 0x140   :  { %v815_v4 = vmax.bf16 %v1515_v3, %v814_v2 }
 0x142   :  { %1278 = vmatmul.mubr.bf16.vlgmr.msra.gmra.mxu0 %v815_v4 }
 0x202   :  { %v921_v8 = vpop.f32.mrf.mxu0 }
 0x203   :  { %v922_v9 = vadd.f32 %v1137_v7, %v921_v8 }
 0x204   :  { %v1279_v10 = vpop.f32.mrf.mxu0 }
 0x205   :  { %v927_v11 = vpack.c.bf16 %v922_v9, %v922_v9 }
 0x206   :  { %v924_v12 = vpop.f32.mrf.mxu0 }
 0x207   :  { %v928_v13 = vmax.bf16 %v1515_v3, %v927_v11 }
 0x208   :  { %v1280_v14 = vpop.f32.mrf.mxu0 }
 0x209   :  { %1298 = vmatmul.mubr.bf16.vlgmr.msra.gmra.mxu1 %v928_v13 }
 0x2c9   :  { %v1034_v16 = vpop.f32.mrf.mxu1 }
 0x2ca   :  { %v1035_v17 = vadd.f32 %v1146_v15, %v1034_v16 }
 0x2cb   :  { %v1299_v18 = vpop.f32.mrf.mxu1 }
 0x2cc   :  { %v1041_v19 = vsel %vm1040_vm1, %v1035_v17, -inf }
 0x2cd   :  { %1042 = vmax.xlane.f32.xlu0 %v1041_v19  ;;  %v1037_v20 = vpop.f32.mrf.mxu1 }
 0x2cf   :  { %v1300_v21 = vpop.f32.mrf.mxu1 }
 0x356   :  { %v1043_v22 = vpop.xlane.xlu0 %1042 }
 0x357   :  { %v1044_v23 = vsub.f32 %v1035_v17, %v1043_v22 }
 0x359   :  { %v1045_v24 = vmul.f32 1.442695, %v1044_v23 }
 0x35b   :  { %1394 = vpow2.f32 %v1045_v24 }
 0x368   :  { %v1395_v25 = vpop.eup %1394 }
 0x369   :  { %v1047_v26 = vsel %vm1040_vm1, %v1395_v25, 0.0 }
 0x36a   :  { %1048 = vadd.xlane.f32.xlu0 %v1047_v26 }
 0x3f3   :  { %v1049_v27 = vpop.xlane.xlu0 %1048 }
 0x3f4   :  { %1396 = vlog2.f32 %v1049_v27 }
 0x401   :  { %v1397_v28 = vpop.eup %1396 }
 0x402   :  { %v1051_v29 = vmul.f32 0.6931472, %v1397_v28 }
 0x404   :  { %v1052_v30 = vadd.f32 %v1051_v29, %v1043_v22 }
 0x406   :  { %v1053_v31 = vsub.f32 %v1035_v17, %v1052_v30 }
 0x408   :  { %1054 = vst [vmem:[#allocation10] sm:$0x3] %v1053_v31 }
 0x409   :  { %1489 = shalt.err (!%p1486_p10)
}
 0x40a   :  { %1064 = dma.vmem_to_hbm [thread:$0]  %s1062_s6, 32, %s1621_s7, [#allocation4]  }
 0x40b   :  { %1504 = dma.done.wait [#allocation4], 32  }
 0x40c   :  { %1505 = vsyncadd [#allocation4], 4294967264 }
 0x40d   :  { %1068 = vsyncpa [#allocation3], 1 }
 0x40e   :  { %1069 = vsyncpa [#allocation6], 1 }
 0x40f   :  { %1070 = vsyncpa [#allocation9], 1 }
 0x410   :  { %1071 = vsyncpa [#allocation4], 1 }

</bundles_post_ra>
